<compile_context>
chip_gen: v5e
topology: v5e:2x2
jax: 0.10.0
libtpu: 0.0.40
codegen_flags: <defaults>
</compile_context>

<pallas_src>
import functools

import jax
import jax.numpy as jnp
from jax.experimental import pallas as pl
from jax.experimental.pallas import tpu as pltpu


def _ot_loss_soft_kernel(x_ref, t_ref, tri_ref, out_ref, acc_ref, *,
                         n_rows, n_classes, mask_rows):
    pid = pl.program_id(0)

    @pl.when(pid == 0)
    def _init():
        acc_ref[...] = jnp.zeros_like(acc_ref)

    x = x_ref[...].astype(jnp.float32)          # (TILE, C) predicted distribution
    t = t_ref[...].astype(jnp.float32)          # (TILE, 1) target label (as a value)
    tn, c = x.shape

    # soft_target[i, j] = softmax_j(-|t_i - j|), built in-kernel (never touches HBM).
    ranks = jax.lax.broadcasted_iota(jnp.int32, (tn, c), 1).astype(jnp.float32)
    logits = -jnp.abs(t - ranks)
    m = jnp.max(logits, axis=-1, keepdims=True)
    e = jnp.exp(logits - m)
    inv = 1.0 / jnp.sum(e, axis=-1, keepdims=True)     # one divide per row
    d = x - e * inv                                    # output - soft_target

    if mask_rows:
        # Zero out padded rows of the final (partial) block so garbage in the
        # padded region (possibly NaN/Inf) contributes nothing.
        row = pid * tn + jax.lax.broadcasted_iota(jnp.int32, (tn, 1), 0)
        d = jnp.where(row < n_rows, d, 0.0)

    # cumsum over classes on the MXU:  cum[i, j] = sum_{k<=j} d[i, k] = (d @ tri)[i, j]
    # with tri[k, j] = (k <= j).  tri is exactly 0/1; split d into a bf16-exact high
    # part plus a small residual so the result stays f32-accurate even if the MXU
    # contracts operands at bf16 precision.
    tri = tri_ref[...]
    d_hi = d.astype(jnp.bfloat16).astype(jnp.float32)
    d_lo = d - d_hi
    cum = (jnp.dot(d_hi, tri, preferred_element_type=jnp.float32) +
           jnp.dot(d_lo, tri, preferred_element_type=jnp.float32))

    # Partial L1 sum for this tile -> running (1, 1) accumulator.
    part = jnp.sum(jnp.abs(cum), axis=1, keepdims=True)    # (TILE, 1) lane reduce
    acc_ref[...] += jnp.sum(part, axis=0, keepdims=True)   # (1, 1) sublane reduce

    @pl.when(pid == pl.num_programs(0) - 1)
    def _finalize():
        out_ref[...] = acc_ref[...] * (1.0 / (n_rows * n_classes))


def _pick_tile_rows(n_rows, n_classes, itemsize):
    # ~1 MiB of `output` per grid step: big enough to amortize the ~0.35 us per-step
    # overhead, small enough that double-buffered inputs + (TILE, C) f32 temporaries
    # fit comfortably under every generation's default scoped-VMEM limit.
    sub = 8 * max(1, 4 // max(1, itemsize))     # 8 rows f32 / 16 bf16 / 32 int8
    budget_rows = max(sub, (1 << 20) // max(1, n_classes * itemsize))
    tile = min(max(n_rows, sub), budget_rows, 4096)
    return max(sub, (tile // sub) * sub)


def ot_loss_soft(output, target, n_classes=None, *, tile_rows=None):
    """output: (N, C) predicted distribution, target: (N,) labels -> scalar f32 loss."""
    output = jnp.asarray(output)
    target = jnp.asarray(target)
    n, c = output.shape
    if n_classes is None:
        n_classes = c
    if n_classes != c:
        raise ValueError(f"output has {c} classes, expected n_classes={n_classes}")

    if tile_rows is None:
        tile_rows = _pick_tile_rows(n, c, output.dtype.itemsize)
    grid = (pl.cdiv(n, tile_rows),)
    mask_rows = (n % tile_rows) != 0

    target_col = target.reshape(n, 1)           # (N, 1); dtype preserved (cast in-kernel)
    # Upper-triangular ones (C, C): tri[k, j] = 1 iff k <= j  => d @ tri == cumsum(d).
    tri = (jnp.arange(c, dtype=jnp.int32)[:, None]
           <= jnp.arange(c, dtype=jnp.int32)[None, :]).astype(jnp.float32)

    kernel = functools.partial(_ot_loss_soft_kernel,
                               n_rows=n, n_classes=c, mask_rows=mask_rows)

    out = pl.pallas_call(
        kernel,
        out_shape=jax.ShapeDtypeStruct((1, 1), jnp.float32),
        grid=grid,
        in_specs=[
            pl.BlockSpec((tile_rows, c), lambda i: (i, 0)),   # output rows (pipelined)
            pl.BlockSpec((tile_rows, 1), lambda i: (i, 0)),   # target column
            pl.BlockSpec((c, c), lambda i: (0, 0)),           # tri: constant block, DMA'd once
        ],
        out_specs=pl.BlockSpec((1, 1), lambda i: (0, 0)),
        scratch_shapes=[pltpu.VMEM((1, 1), jnp.float32)],
        compiler_params=pltpu.CompilerParams(
            dimension_semantics=("arbitrary",)),
    )(output, target_col, tri)
    return out[0, 0]


def _reference(output, target, n_classes):
    """Pure-JAX mirror of the PyTorch OTLossSoft.forward."""
    out = output.astype(jnp.float32)
    ranks = jnp.arange(n_classes, dtype=jnp.float32)[None, :]
    t = target.astype(jnp.float32)[:, None]
    soft_target = jax.nn.softmax(-jnp.abs(t - ranks), axis=-1)
    return jnp.mean(jnp.abs(jnp.cumsum(out, axis=1) - jnp.cumsum(soft_target, axis=1)))


if __name__ == "__main__":
    key = jax.random.PRNGKey(0)
    k1, k2 = jax.random.split(key)
    N, C = 64, 32                                   # 64 samples, 32 ordinal classes
    logits = jax.random.normal(k1, (N, C), dtype=jnp.float32)
    output = jax.nn.softmax(logits, axis=-1)        # model's predicted distribution
    target = jax.random.randint(k2, (N,), 0, C).astype(jnp.float32)

    loss = ot_loss_soft(output, target, n_classes=C)
    jax.block_until_ready(loss)

    ref = _reference(output, target, C)
    assert jnp.allclose(loss, ref, atol=1e-5, rtol=1e-5), (loss, ref)

    print("KERNEL_OK")
</pallas_src>

<mosaic_0001>
module attributes {stable_mosaic.version = 11 : i64} {
  func.func @_ot_loss_soft_kernel(%arg0: i32, %arg1: memref<64x32xf32, #tpu.memory_space<vmem>>, %arg2: memref<64x1xf32, #tpu.memory_space<vmem>>, %arg3: memref<32x32xf32, #tpu.memory_space<vmem>>, %arg4: memref<1x1xf32, #tpu.memory_space<vmem>>, %arg5: memref<1x1xf32, #tpu.memory_space<vmem>>) attributes {dimension_semantics = [#tpu.dimension_semantics<arbitrary>], iteration_bounds = array<i64: 1>, scalar_prefetch = 0 : i64, scratch_operands = 1 : i64, tpu.core_type = #tpu.core_type<tc>, window_params = [{transform_indices = @transform_0, window_bounds = array<i64: 64, 32>}, {transform_indices = @transform_1, window_bounds = array<i64: 64, 1>}, {pipeline_mode = #tpu.pipeline_mode<synchronous>, transform_indices = @transform_2, window_bounds = array<i64: 32, 32>}, {pipeline_mode = #tpu.pipeline_mode<synchronous>, transform_indices = @transform_3, window_bounds = array<i64: 1, 1>}]} {
    %c0_i32 = arith.constant 0 : i32
    %0 = arith.cmpi eq, %arg0, %c0_i32 : i32
    %1 = arith.extui %0 : i1 to i32
    %c0_i32_0 = arith.constant 0 : i32
    %2 = arith.cmpi ne, %1, %c0_i32_0 : i32
    scf.if %2 {
      %cst_19 = arith.constant 0.000000e+00 : f32
      %42 = vector.broadcast %cst_19 : f32 to vector<1x1xf32>
      %c0_20 = arith.constant 0 : index
      %c0_21 = arith.constant 0 : index
      %43 = vector.load %arg5[%c0_20, %c0_21] : memref<1x1xf32, #tpu.memory_space<vmem>>, vector<1x1xf32>
      tpu.vector_store %arg5[%c0_20, %c0_21], %42 {strides = array<i32>} : memref<1x1xf32, #tpu.memory_space<vmem>>, vector<1x1xf32>,
    } else {
    }
    %c0 = arith.constant 0 : index
    %c0_1 = arith.constant 0 : index
    %3 = vector.load %arg1[%c0, %c0_1] : memref<64x32xf32, #tpu.memory_space<vmem>>, vector<64x32xf32>
    %c0_2 = arith.constant 0 : index
    %c0_3 = arith.constant 0 : index
    %4 = vector.load %arg2[%c0_2, %c0_3] : memref<64x1xf32, #tpu.memory_space<vmem>>, vector<64x1xf32>
    %5 = tpu.iota {dimensions = array<i32: 1>} : vector<64x32xi32>
    %6 = arith.sitofp %5 : vector<64x32xi32> to vector<64x32xf32>
    %7 = vector.broadcast %4 : vector<64x1xf32> to vector<64x32xf32>
    %8 = arith.subf %7, %6 : vector<64x32xf32>
    %9 = math.absf %8 : vector<64x32xf32>
    %cst = arith.constant 0.000000e+00 : f32
    %10 = vector.broadcast %cst : f32 to vector<64x32xf32>
    %11 = arith.subf %10, %9 : vector<64x32xf32>
    %cst_4 = arith.constant dense<0xFF800000> : vector<64xf32>
    %12 = vector.multi_reduction <maximumf>, %11, %cst_4 [1] : vector<64x32xf32> to vector<64xf32>
    %13 = vector.shape_cast %12 : vector<64xf32> to vector<64x1xf32>
    %14 = vector.broadcast %13 : vector<64x1xf32> to vector<64x32xf32>
    %15 = arith.subf %11, %14 : vector<64x32xf32>
    %16 = math.exp %15 : vector<64x32xf32>
    %cst_5 = arith.constant dense<0.000000e+00> : vector<64xf32>
    %17 = vector.multi_reduction <add>, %16, %cst_5 [1] : vector<64x32xf32> to vector<64xf32>
    %18 = vector.shape_cast %17 : vector<64xf32> to vector<64x1xf32>
    %cst_6 = arith.constant 1.000000e+00 : f32
    %19 = vector.broadcast %cst_6 : f32 to vector<64x1xf32>
    %20 = arith.divf %19, %18 : vector<64x1xf32>
    %21 = vector.broadcast %20 : vector<64x1xf32> to vector<64x32xf32>
    %22 = arith.mulf %16, %21 : vector<64x32xf32>
    %23 = arith.subf %3, %22 : vector<64x32xf32>
    %c0_7 = arith.constant 0 : index
    %c0_8 = arith.constant 0 : index
    %24 = vector.load %arg3[%c0_7, %c0_8] : memref<32x32xf32, #tpu.memory_space<vmem>>, vector<32x32xf32>
    %25 = arith.truncf %23 : vector<64x32xf32> to vector<64x32xbf16>
    %26 = arith.extf %25 : vector<64x32xbf16> to vector<64x32xf32>
    %27 = arith.subf %23, %26 : vector<64x32xf32>
    %cst_9 = arith.constant dense<0.000000e+00> : vector<64x32xf32>
    %28 = tpu.matmul %26, %24, %cst_9 {dimension_numbers = #tpu.dot_dimension_numbers<[1], [0], [0], [1], [0, 0, 1, 1], [], []>} : vector<64x32xf32>, vector<32x32xf32>, vector<64x32xf32> -> vector<64x32xf32>
    %cst_10 = arith.constant dense<0.000000e+00> : vector<64x32xf32>
    %29 = tpu.matmul %27, %24, %cst_10 {dimension_numbers = #tpu.dot_dimension_numbers<[1], [0], [0], [1], [0, 0, 1, 1], [], []>} : vector<64x32xf32>, vector<32x32xf32>, vector<64x32xf32> -> vector<64x32xf32>
    %30 = arith.addf %28, %29 : vector<64x32xf32>
    %31 = math.absf %30 : vector<64x32xf32>
    %cst_11 = arith.constant dense<0.000000e+00> : vector<64xf32>
    %32 = vector.multi_reduction <add>, %31, %cst_11 [1] : vector<64x32xf32> to vector<64xf32>
    %33 = vector.shape_cast %32 : vector<64xf32> to vector<64x1xf32>
    %c0_12 = arith.constant 0 : index
    %c0_13 = arith.constant 0 : index
    %34 = vector.load %arg5[%c0_12, %c0_13] : memref<1x1xf32, #tpu.memory_space<vmem>>, vector<1x1xf32>
    %cst_14 = arith.constant dense<0.000000e+00> : vector<1xf32>
    %35 = vector.multi_reduction <add>, %33, %cst_14 [0] : vector<64x1xf32> to vector<1xf32>
    %36 = vector.shape_cast %35 : vector<1xf32> to vector<1x1xf32>
    %37 = arith.addf %34, %36 : vector<1x1xf32>
    %c0_15 = arith.constant 0 : index
    %c0_16 = arith.constant 0 : index
    %38 = vector.load %arg5[%c0_15, %c0_16] : memref<1x1xf32, #tpu.memory_space<vmem>>, vector<1x1xf32>
    tpu.vector_store %arg5[%c0_15, %c0_16], %37 {strides = array<i32>} : memref<1x1xf32, #tpu.memory_space<vmem>>, vector<1x1xf32>,
    %c0_i32_17 = arith.constant 0 : i32
    %39 = arith.cmpi eq, %arg0, %c0_i32_17 : i32
    %40 = arith.extui %39 : i1 to i32
    %c0_i32_18 = arith.constant 0 : i32
    %41 = arith.cmpi ne, %40, %c0_i32_18 : i32
    scf.if %41 {
      %c0_19 = arith.constant 0 : index
      %c0_20 = arith.constant 0 : index
      %42 = vector.load %arg5[%c0_19, %c0_20] : memref<1x1xf32, #tpu.memory_space<vmem>>, vector<1x1xf32>
      %cst_21 = arith.constant 4.8828125E-4 : f32
      %43 = vector.broadcast %cst_21 : f32 to vector<1x1xf32>
      %44 = arith.mulf %42, %43 : vector<1x1xf32>
      %c0_22 = arith.constant 0 : index
      %c0_23 = arith.constant 0 : index
      %45 = vector.load %arg4[%c0_22, %c0_23] : memref<1x1xf32, #tpu.memory_space<vmem>>, vector<1x1xf32>
      tpu.vector_store %arg4[%c0_22, %c0_23], %44 {strides = array<i32>} : memref<1x1xf32, #tpu.memory_space<vmem>>, vector<1x1xf32>,
    } else {
    }
    return
  }
  func.func @transform_0(%arg0: i32) -> (i32, i32) {
    %c0_i32 = arith.constant 0 : i32
    %c0_i32_0 = arith.constant 0 : i32
    return %arg0, %c0_i32 : i32, i32
  }
  func.func @transform_1(%arg0: i32) -> (i32, i32) {
    %c0_i32 = arith.constant 0 : i32
    %c0_i32_0 = arith.constant 0 : i32
    return %arg0, %c0_i32 : i32, i32
  }
  func.func @transform_2(%arg0: i32) -> (i32, i32) {
    %c0_i32 = arith.constant 0 : i32
    %c0_i32_0 = arith.constant 0 : i32
    %c0_i32_1 = arith.constant 0 : i32
    return %c0_i32, %c0_i32_0 : i32, i32
  }
  func.func @transform_3(%arg0: i32) -> (i32, i32) {
    %c0_i32 = arith.constant 0 : i32
    %c0_i32_0 = arith.constant 0 : i32
    %c0_i32_1 = arith.constant 0 : i32
    return %c0_i32, %c0_i32_0 : i32, i32
  }
}

</mosaic_0001>

<bundles_post_ra>
// kernel: tpu_custom_call.1
= control target key start
LH: loop header
LB: loop body
LE: loop exit
PB: predicated region body
PF: predicated region fallthrough
CT: control target
= control target key end

     0   :  { %v630_v2 = vmov 0   ;;  %s965_s0 = inlined_call_operand.vmem [shape: f32[64,32], index: 0, kind: input, shape index: {}]   ;;  %s966_s1 = inlined_call_operand.vmem [shape: f32[64,1], index: 1, kind: input, shape index: {}]   ;;  %s967_s2 = inlined_call_operand.vmem [shape: f32[32,32], index: 2, kind: input, shape index: {}]   ;;  %s968_s3 = inlined_call_operand.hbm [shape: f32[1,1], index: 3, kind: output, shape index: {}]  }
   0x1   :  { %v30_v0 = vld [vmem:[%s966_s1 + $0x8] sm:$0xff]  ;;  %v29_v1 = vld [vmem:[%s966_s1] sm:$0xff]  ;;  %570 = vset.pattern.permute.xlu1 %v630_v2  ;;  %569 = vset.pattern.permute.xlu0 %v630_v2  ;;  %v31_v3 = vld [vmem:[%s966_s1 + $0x10] sm:$0xff] }
   0x2   :  { %47 = vperm.xlu1 %570, %v30_v0   ;;  %42 = vperm.xlu0 %569, %v29_v1  }
   0x3   :  { %8 = vsyncpa [#allocation4], 0  ;;  %571 = vset.pattern.permute.xlu2 %v630_v2  ;;  %v34_v4 = vld [vmem:[%s966_s1 + $0x28] sm:$0xff]  ;;  %v33_v5 = vld [vmem:[%s966_s1 + $0x20] sm:$0xff]  ;;  %v37_v9 = vlaneseq  ;;  %vm104_vm0 = vcmask 261120   ;;  %s533_s26 = sshll.u32 %s968_s3, 4  ;;  %s534_s26 = int_to_ptr.hbm [resolvable:$true] %s533_s26 }
   0x4   :  { %52 = vperm.xlu2 %571, %v31_v3   ;;  %v35_v6 = vld [vmem:[%s966_s1 + $0x30] sm:$0xff]  ;;  %v36_v7 = vld [vmem:[%s966_s1 + $0x38] sm:$0xff] }
   0x5   :  { %v32_v8 = vld [vmem:[%s966_s1 + $0x18] sm:$0xff]  ;;  %v38_v10 = vand.u32 127, %v37_v9 }
   0x7   :  { %v39_v12 = vcvt.s32.f32 %v38_v10 }
   0xa   :  { %67 = vperm.xlu1 %570, %v34_v4   ;;  %62 = vperm.xlu0 %569, %v33_v5  }
   0xc   :  { %72 = vperm.xlu2 %571, %v35_v6  }
  0x12   :  { %77 = vperm.xlu1 %570, %v36_v7   ;;  %57 = vperm.xlu0 %569, %v32_v8  }
  0x5e   :  { %v53_v11 = vpop.permute.xlu2 %52 }
  0x5f   :  { %v82_v26 = vsub.f32 %v53_v11, %v39_v12 }
  0x61   :  { %v90_v32 = vand.u32 2147483647, %v82_v26 }
  0x63   :  { %v98_v40 = vsub.f32 0.0, %v90_v32 }
  0x65   :  { %v111_v46 = vsel %vm104_vm0, %v98_v40, -inf }
  0x66   :  { %v73_v21 = vpop.permute.xlu2 %72 }
  0x67   :  { %v86_v29 = vsub.f32 %v73_v21, %v39_v12 }
  0x69   :  { %v94_v35 = vand.u32 2147483647, %v86_v29  ;;  %v315_v29 = vld [vmem:[%s967_s2 + $0x10] sm:$0xff] }
  0x6b   :  { %v102_v41 = vsub.f32 0.0, %v94_v35 }
  0x6d   :  { %v123_v47 = vsel %vm104_vm0, %v102_v41, -inf }
  0x74   :  { %v48_v13 = vpop.permute.xlu1 %47  ;;  %v43_v14 = vpop.permute.xlu0 %42 }
  0x75   :  { %v81_v15 = vsub.f32 %v48_v13, %v39_v12  ;;  %v80_v16 = vsub.f32 %v43_v14, %v39_v12 }
  0x77   :  { %v89_v17 = vand.u32 2147483647, %v81_v15  ;;  %v88_v18 = vand.u32 2147483647, %v80_v16 }
  0x79   :  { %v97_v19 = vsub.f32 0.0, %v89_v17  ;;  %v96_v20 = vsub.f32 0.0, %v88_v18 }
  0x7b   :  { %v108_v22 = vsel %vm104_vm0, %v97_v19, -inf  ;;  %v105_v23 = vsel %vm104_vm0, %v96_v20, -inf }
  0x7c   :  { %109 = vmax.xlane.f32.xlu1 %v108_v22  ;;  %v68_v24 = vpop.permute.xlu1 %67  ;;  %106 = vmax.xlane.f32.xlu2 %v105_v23  ;;  %v63_v25 = vpop.permute.xlu0 %62 }
  0x7d   :  { %v85_v27 = vsub.f32 %v68_v24, %v39_v12  ;;  %v84_v28 = vsub.f32 %v63_v25, %v39_v12 }
  0x7f   :  { %v93_v30 = vand.u32 2147483647, %v85_v27  ;;  %v92_v31 = vand.u32 2147483647, %v84_v28  ;;  %v316_v28 = vld [vmem:[%s967_s2 + $0x18] sm:$0xff] }
  0x80   :  { %442 = vmatpush.msra.mxu1 %v316_v28  ;;  %377 = vmatpush.msra.mxu0 %v316_v28 }
  0x81   :  { %v101_v33 = vsub.f32 0.0, %v93_v30  ;;  %v100_v34 = vsub.f32 0.0, %v92_v31  ;;  %562 = vmatpush.msra.mxu3 %v316_v28  ;;  %558 = vmatpush.msra.mxu2 %v316_v28  ;;  %v314_v30 = vld [vmem:[%s967_s2 + $0x8] sm:$0xff]  ;;  %v313_v31 = vld [vmem:[%s967_s2] sm:$0xff] }
  0x82   :  { %443 = vmatpush.msra.mxu1 %v315_v29  ;;  %378 = vmatpush.msra.mxu0 %v315_v29 }
  0x83   :  { %v120_v36 = vsel %vm104_vm0, %v101_v33, -inf  ;;  %v117_v37 = vsel %vm104_vm0, %v100_v34, -inf  ;;  %563 = vmatpush.msra.mxu3 %v315_v29  ;;  %559 = vmatpush.msra.mxu2 %v315_v29 }
  0x84   :  { %v78_v38 = vpop.permute.xlu1 %77  ;;  %121 = vmax.xlane.f32.xlu2 %v120_v36  ;;  %118 = vmax.xlane.f32.xlu0 %v117_v37  ;;  %v58_v39 = vpop.permute.xlu0 %57 }
  0x85   :  { %v83_v42 = vsub.f32 %v58_v39, %v39_v12  ;;  %v87_v43 = vsub.f32 %v78_v38, %v39_v12  ;;  %444 = vmatpush.msra.mxu1 %v314_v30  ;;  %379 = vmatpush.msra.mxu0 %v314_v30 }
  0x86   :  { %564 = vmatpush.msra.mxu3 %v314_v30  ;;  %560 = vmatpush.msra.mxu2 %v314_v30 }
  0x87   :  { %v91_v44 = vand.u32 2147483647, %v83_v42  ;;  %v95_v48 = vand.u32 2147483647, %v87_v43  ;;  %445 = vmatpush.msra.mxu1 %v313_v31  ;;  %380 = vmatpush.msra.mxu0 %v313_v31 }
  0x88   :  { %565 = vmatpush.msra.mxu3 %v313_v31  ;;  %561 = vmatpush.msra.mxu2 %v313_v31 }
  0x89   :  { %v99_v45 = vsub.f32 0.0, %v91_v44  ;;  %v103_v50 = vsub.f32 0.0, %v95_v48 }
  0x8b   :  { %v114_v49 = vsel %vm104_vm0, %v99_v45, -inf  ;;  %v126_v51 = vsel %vm104_vm0, %v103_v50, -inf }
  0x8c   :  { %112 = vmax.xlane.f32.xlu2 %v111_v46  ;;  %124 = vmax.xlane.f32.xlu0 %v123_v47 }
  0x8d   :  { %115 = vmax.xlane.f32.xlu1 %v114_v49 }
  0x94   :  { %127 = vmax.xlane.f32.xlu2 %v126_v51 }
  0xef   :  { %v110_v52 = vpop.xlane.xlu1 %109  ;;  %v107_v53 = vpop.xlane.xlu2 %106 }
  0xf0   :  { %v130_v54 = vsub.f32 %v97_v19, %v110_v52  ;;  %v129_v55 = vsub.f32 %v96_v20, %v107_v53 }
  0xf2   :  { %v139_v56 = vmul.f32 1.442695, %v130_v54  ;;  %v137_v57 = vmul.f32 1.442695, %v129_v55 }
  0xf4   :  { %572 = vpow2.f32 %v139_v56 }
  0xf5   :  { %574 = vpow2.f32 %v137_v57 }
  0xf7   :  { %v122_v58 = vpop.xlane.xlu2 %121  ;;  %v119_v59 = vpop.xlane.xlu0 %118 }
  0xf8   :  { %v134_v60 = vsub.f32 %v101_v33, %v122_v58  ;;  %v133_v61 = vsub.f32 %v100_v34, %v119_v59 }
  0xfa   :  { %v685_v62 = vpop.eup %572  ;;  %v147_v63 = vmul.f32 1.442695, %v134_v60  ;;  %v145_v0 = vmul.f32 1.442695, %v133_v61 }
  0xfb   :  { %v687_v1 = vpop.eup %574  ;;  %v156_v2 = vsel %vm104_vm0, %v685_v62, 0.0 }
  0xfc   :  { %576 = vpow2.f32 %v147_v63  ;;  %157 = vadd.xlane.f32.xlu2 %v156_v2  ;;  %v153_v3 = vsel %vm104_vm0, %v687_v1, 0.0 }
  0xfd   :  { %578 = vpow2.f32 %v145_v0  ;;  %154 = vadd.xlane.f32.xlu0 %v153_v3 }
  0xff   :  { %v113_v4 = vpop.xlane.xlu2 %112  ;;  %v125_v5 = vpop.xlane.xlu0 %124 }
 0x100   :  { %v131_v6 = vsub.f32 %v98_v40, %v113_v4  ;;  %v116_v7 = vpop.xlane.xlu1 %115  ;;  %v135_v8 = vsub.f32 %v102_v41, %v125_v5 }
 0x101   :  { %v132_v9 = vsub.f32 %v99_v45, %v116_v7 }
 0x102   :  { %v693_v10 = vpop.eup %576  ;;  %v141_v11 = vmul.f32 1.442695, %v131_v6  ;;  %v149_v12 = vmul.f32 1.442695, %v135_v8 }
 0x103   :  { %v695_v13 = vpop.eup %578  ;;  %v143_v14 = vmul.f32 1.442695, %v132_v9  ;;  %v168_v15 = vsel %vm104_vm0, %v693_v10, 0.0 }
 0x104   :  { %580 = vpow2.f32 %v141_v11  ;;  %v165_v16 = vsel %vm104_vm0, %v695_v13, 0.0 }
 0x105   :  { %582 = vpow2.f32 %v143_v14  ;;  %169 = vadd.xlane.f32.xlu0 %v168_v15  ;;  %166 = vadd.xlane.f32.xlu1 %v165_v16 }
 0x106   :  { %584 = vpow2.f32 %v149_v12 }
 0x107   :  { %v128_v17 = vpop.xlane.xlu2 %127 }
 0x108   :  { %v136_v18 = vsub.f32 %v103_v50, %v128_v17 }
 0x10a   :  { %v701_v19 = vpop.eup %580  ;;  %v151_v20 = vmul.f32 1.442695, %v136_v18 }
 0x10b   :  { %v703_v21 = vpop.eup %582  ;;  %v159_v22 = vsel %vm104_vm0, %v701_v19, 0.0 }
 0x10c   :  { %v707_v23 = vpop.eup %584  ;;  %586 = vpow2.f32 %v151_v20  ;;  %v162_v24 = vsel %vm104_vm0, %v703_v21, 0.0 }
 0x10d   :  { %163 = vadd.xlane.f32.xlu0 %v162_v24  ;;  %160 = vadd.xlane.f32.xlu1 %v159_v22  ;;  %v171_v25 = vsel %vm104_vm0, %v707_v23, 0.0 }
 0x10e   :  { %172 = vadd.xlane.f32.xlu2 %v171_v25 }
 0x112   :  { %v713_v26 = vpop.eup %586 }
 0x113   :  { %v174_v27 = vsel %vm104_vm0, %v713_v26, 0.0 }
 0x115   :  { %175 = vadd.xlane.f32.xlu1 %v174_v27  ;;  %v21_v27 = vld [vmem:[%s965_s0] sm:$0xff] }
 0x16f   :  { %v158_v32 = vpop.xlane.xlu2 %157 }
 0x170   :  { %588 = vrcp.f32 %v158_v32  ;;  %v155_v33 = vpop.xlane.xlu0 %154  ;;  %v201_v43 = vand.u32 2147483647, %v158_v32  ;;  %v203_v44 = vand.u32 2147483648, %v158_v32  ;;  %vm197_vm1 = vweird.f32 %v158_v32 }
 0x171   :  { %590 = vrcp.f32 %v155_v33  ;;  %v186_v46 = vand.u32 2147483647, %v155_v33  ;;  %vm182_vm3 = vweird.f32 %v155_v33  ;;  %v188_v50 = vand.u32 2147483648, %v155_v33 }
 0x172   :  { %vm739_vm5 = vcmp.eq.f32.partialorder %v201_v43, 8.507059e+37  ;;  %v204_v53 = vor.u32 1.1754944e-38, %v203_v44 }
 0x173   :  { %vm743_vm6 = vcmp.eq.f32.partialorder %v186_v46, 8.507059e+37  ;;  %v189_v5 = vor.u32 1.1754944e-38, %v188_v50 }
 0x176   :  { %v589_v34 = vpop.eup %588 }
 0x177   :  { %v591_v35 = vpop.eup %590  ;;  %v193_v36 = vmul.f32 %v589_v34, %v158_v32  ;;  %vm198_vm2 = vweird.f32 %v589_v34 }
 0x178   :  { %v178_v37 = vmul.f32 %v591_v35, %v155_v33  ;;  %v729_v38 = vpop.xlane.xlu1 %166  ;;  %v731_v39 = vpop.xlane.xlu0 %169  ;;  %vm183_vm4 = vweird.f32 %v591_v35  ;;  %vm751_vm7 = vmor %vm197_vm1, %vm198_vm2 }
 0x179   :  { %v194_v40 = vsub.f32 1.0, %v193_v36  ;;  %592 = vrcp.f32 %v729_v38  ;;  %v246_v58 = vand.u32 2147483647, %v729_v38  ;;  %v248_v59 = vand.u32 2147483648, %v729_v38  ;;  %vm766_vm8 = vmor %vm182_vm3, %vm183_vm4 }
 0x17a   :  { %v179_v41 = vsub.f32 1.0, %v178_v37  ;;  %594 = vrcp.f32 %v731_v39  ;;  %v263_v3 = vand.u32 2147483648, %v731_v39  ;;  %vm242_vm9 = vweird.f32 %v729_v38 }
 0x17b   :  { %v195_v42 = vmul.f32 %v589_v34, %v194_v40  ;;  %v261_v8 = vand.u32 2147483647, %v731_v39  ;;  %vm782_vm10 = vcmp.eq.f32.partialorder %v246_v58, 8.507059e+37  ;;  %v249_v15 = vor.u32 1.1754944e-38, %v248_v59  ;;  %v22_v40 = vld [vmem:[%s965_s0 + $0x8] sm:$0xff] }
 0x17c   :  { %v180_v45 = vmul.f32 %v591_v35, %v179_v41  ;;  %vm257_vm11 = vweird.f32 %v731_v39  ;;  %v792_v18 = vor.u32 1.1754944e-38, %v263_v3 }
 0x17d   :  { %v196_v47 = vadd.f32 %v589_v34, %v195_v42  ;;  %vm815_vm2 = vcmp.eq.f32.partialorder %v261_v8, 8.507059e+37 }
 0x17e   :  { %v181_v49 = vadd.f32 %v591_v35, %v180_v45 }
 0x17f   :  { %v735_v48 = vpop.eup %592  ;;  %v200_v4 = vsel %vm751_vm7, %v589_v34, %v196_v47 }
 0x180   :  { %v737_v51 = vpop.eup %594  ;;  %v238_v55 = vmul.f32 %v735_v48, %v729_v38  ;;  %v749_v56 = vpop.xlane.xlu1 %160  ;;  %v185_v7 = vsel %vm766_vm8, %v591_v35, %v181_v49  ;;  %v205_v17 = vsel %vm739_vm5, %v204_v53, %v200_v4  ;;  %vm243_vm12 = vweird.f32 %v735_v48 }
 0x181   :  { %v253_v60 = vmul.f32 %v737_v51, %v731_v39  ;;  %596 = vrcp.f32 %v749_v56  ;;  %v760_v61 = vpop.xlane.xlu2 %172  ;;  %v762_v63 = vpop.xlane.xlu0 %163  ;;  %v216_v9 = vand.u32 2147483647, %v749_v56  ;;  %v218_v11 = vand.u32 2147483648, %v749_v56  ;;  %vm244_vm5 = vmor %vm242_vm9, %vm243_vm12 }
 0x182   :  { %v239_v2 = vsub.f32 1.0, %v238_v55  ;;  %598 = vrcp.f32 %v760_v61  ;;  %v278_v16 = vand.u32 2147483648, %v760_v61  ;;  %vm258_vm13 = vweird.f32 %v737_v51 }
 0x183   :  { %v254_v6 = vsub.f32 1.0, %v253_v60  ;;  %600 = vrcp.f32 %v762_v63  ;;  %v190_v20 = vsel %vm743_vm6, %v189_v5, %v185_v7  ;;  %vm212_vm14 = vweird.f32 %v749_v56  ;;  %vm847_vm8 = vmor %vm257_vm11, %vm258_vm13  ;;  %v25_v60 = vld [vmem:[%s965_s0 + $0x20] sm:$0xff] }
 0x184   :  { %v240_v12 = vmul.f32 %v735_v48, %v239_v2  ;;  %v276_v25 = vand.u32 2147483647, %v760_v61  ;;  %v297_v28 = vmul.f32 %v687_v1, %v190_v20  ;;  %vm806_vm15 = vcmp.eq.f32.partialorder %v216_v9, 8.507059e+37 }
 0x185   :  { %v255_v24 = vmul.f32 %v737_v51, %v254_v6  ;;  %v219_v32 = vor.u32 1.1754944e-38, %v218_v11  ;;  %vm272_vm1 = vweird.f32 %v760_v61  ;;  %v298_v34 = vmul.f32 %v685_v62, %v205_v17  ;;  %v26_v17 = vld [vmem:[%s965_s0 + $0x28] sm:$0xff] }
 0x186   :  { %v241_v35 = vadd.f32 %v735_v48, %v240_v12  ;;  %v279_v37 = vor.u32 1.1754944e-38, %v278_v16  ;;  %vm227_vm3 = vweird.f32 %v762_v63  ;;  %v231_v62 = vand.u32 2147483647, %v762_v63  ;;  %v23_v12 = vld [vmem:[%s965_s0 + $0x10] sm:$0xff] }
 0x187   :  { %v597_v22 = vpop.eup %596  ;;  %v305_v43 = vsub.f32 %v21_v27, %v297_v28  ;;  %v256_v44 = vadd.f32 %v737_v51, %v255_v24  ;;  %vm828_vm4 = vcmp.eq.f32.partialorder %v276_v25, 8.507059e+37  ;;  %v233_v49 = vand.u32 2147483648, %v762_v63 }
 0x188   :  { %v803_v29 = vpop.eup %598  ;;  %v208_v30 = vmul.f32 %v597_v22, %v749_v56  ;;  %v811_v33 = vpop.xlane.xlu1 %175  ;;  %vm213_vm6 = vweird.f32 %v597_v22  ;;  %v838_v53 = vsub.f32 %v22_v40, %v298_v34  ;;  %v245_v57 = vsel %vm244_vm5, %v735_v48, %v241_v35 }
 0x189   :  { %v268_v1 = vmul.f32 %v803_v29, %v760_v61  ;;  %602 = vrcp.f32 %v811_v33  ;;  %v601_v41 = vpop.eup %600  ;;  %v317_v52 = vpack.c.bf16 %v305_v43, %v305_v43  ;;  %vm273_vm7 = vweird.f32 %v803_v29  ;;  %vm858_vm12 = vmor %vm212_vm14, %vm213_vm6 }
 0x18a   :  { %v209_v42 = vsub.f32 1.0, %v208_v30  ;;  %v223_v47 = vmul.f32 %v601_v41, %v762_v63  ;;  %vm228_vm9 = vweird.f32 %v601_v41  ;;  %v250_v0 = vsel %vm782_vm10, %v249_v15, %v245_v57  ;;  %vm877_vm10 = vmor %vm272_vm1, %vm273_vm7  ;;  %v28_v57 = vld [vmem:[%s965_s0 + $0x38] sm:$0xff] }
 0x18b   :  { %v269_v45 = vsub.f32 1.0, %v268_v1  ;;  %v325_v59 = vunpack.c.l.bf16 %v317_v52  ;;  %v301_v4 = vmul.f32 %v695_v13, %v250_v0  ;;  %v260_v5 = vsel %vm847_vm8, %v737_v51, %v256_v44  ;;  %vm893_vm13 = vmor %vm227_vm3, %vm228_vm9 }
 0x18c   :  { %v210_v50 = vmul.f32 %v597_v22, %v209_v42  ;;  %v224_v55 = vsub.f32 1.0, %v223_v47  ;;  %v318_v56 = vpack.c.bf16 %v838_v53, %v838_v53  ;;  %vm881_vm11 = vcmp.eq.f32.partialorder %v231_v62, 8.507059e+37 }
 0x18d   :  { %v270_v54 = vmul.f32 %v803_v29, %v269_v45  ;;  %550 = vmatmul.msk.f32.vlgmr.msra.gmra.mxu1 %vm104_vm0, %v325_v59  ;;  %v333_v7 = vsub.f32 %v305_v43, %v325_v59  ;;  %v309_v11 = vsub.f32 %v25_v60, %v301_v4  ;;  %v265_v20 = vsel %vm815_vm2, %v792_v18, %v260_v5 }
 0x18e   :  { %v211_v38 = vadd.f32 %v597_v22, %v210_v50  ;;  %v225_v3 = vmul.f32 %v601_v41, %v224_v55  ;;  %v302_v25 = vmul.f32 %v693_v10, %v265_v20  ;;  %v326_v28 = vunpack.c.l.bf16 %v318_v56 }
 0x18f   :  { %v603_v2 = vpop.eup %602  ;;  %v271_v39 = vadd.f32 %v803_v29, %v270_v54  ;;  %542 = vmatmul.msk.f32.vlgmr.msra.gmra.mxu0 %vm104_vm0, %v333_v7  ;;  %v321_v24 = vpack.c.bf16 %v309_v11, %v309_v11  ;;  %v293_v10 = vand.u32 2147483648, %v811_v33  ;;  %v291_v36 = vand.u32 2147483647, %v811_v33 }
 0x190   :  { %v283_v6 = vmul.f32 %v603_v2, %v811_v33  ;;  %v215_v8 = vsel %vm858_vm12, %v597_v22, %v211_v38  ;;  %v226_v51 = vadd.f32 %v601_v41, %v225_v3  ;;  %v234_v22 = vor.u32 1.1754944e-38, %v233_v49 }
 0x191   :  { %v220_v14 = vsel %vm806_vm15, %v219_v32, %v215_v8  ;;  %v275_v63 = vsel %vm877_vm10, %v803_v29, %v271_v39  ;;  %vm288_vm14 = vweird.f32 %v603_v2  ;;  %v329_v32 = vunpack.c.l.bf16 %v321_v24 }
 0x192   :  { %v284_v15 = vsub.f32 1.0, %v283_v6  ;;  %v299_v16 = vmul.f32 %v701_v19, %v220_v14  ;;  %v230_v27 = vsel %vm893_vm13, %v601_v41, %v226_v51  ;;  %v280_v31 = vsel %vm828_vm4, %v279_v37, %v275_v63 }
 0x193   :  { %v310_v18 = vsub.f32 %v26_v17, %v302_v25  ;;  %v235_v34 = vsel %vm881_vm11, %v234_v22, %v230_v27  ;;  %vm287_vm15 = vweird.f32 %v811_v33  ;;  %554 = vmatmul.msk.f32.vlgmr.msra.gmra.mxu3 %vm104_vm0, %v329_v32  ;;  %v337_v1 = vsub.f32 %v309_v11, %v329_v32  ;;  %v27_v33 = vld [vmem:[%s965_s0 + $0x30] sm:$0xff] }
 0x194   :  { %v285_v19 = vmul.f32 %v603_v2, %v284_v15  ;;  %v307_v30 = vsub.f32 %v23_v12, %v299_v16  ;;  %v303_v37 = vmul.f32 %v707_v23, %v280_v31  ;;  %vm920_vm1 = vmor %vm287_vm15, %vm288_vm14  ;;  %v334_v42 = vsub.f32 %v838_v53, %v326_v28  ;;  %v24_v23 = vld [vmem:[%s965_s0 + $0x18] sm:$0xff]  ;;  %s632_s0 = smov [#allocation3]  }
 0x195   :  { %v322_v40 = vpack.c.bf16 %v310_v18, %v310_v18  ;;  %551 = vmatmul.msk.f32.gmra.mxu1 %vm104_vm0, %v326_v28  ;;  %v300_v62 = vmul.f32 %v703_v21, %v235_v34  ;;  %546 = vmatmul.msk.f32.vlgmr.msra.gmra.mxu2 %vm104_vm0, %v337_v1  ;;  %v294_v44 = vor.u32 1.1754944e-38, %v293_v10  ;;  %vm292_vm2 = vcmp.eq.f32.partialorder %v291_v36, 8.507059e+37  ;;  %s531_s23 = sshll.u32 %s632_s0, 4  ;;  %s532_s23 = int_to_ptr.vmem [resolvable:$true] %s531_s23 }
 0x196   :  { %v286_v29 = vadd.f32 %v603_v2, %v285_v19  ;;  %v319_v35 = vpack.c.bf16 %v307_v30, %v307_v30  ;;  %v311_v21 = vsub.f32 %v27_v33, %v303_v37  ;;  %vm19_vm3 = vcmask 0  }
 0x197   :  { %543 = vmatmul.msk.f32.gmra.mxu0 %vm104_vm0, %v334_v42  ;;  %v330_v46 = vunpack.c.l.bf16 %v322_v40  ;;  %v308_v47 = vsub.f32 %v24_v23, %v300_v62  ;;  %v631_v33 = vmov 0.0  }
 0x198   :  { %v290_v43 = vsel %vm920_vm1, %v603_v2, %v286_v29  ;;  %v327_v45 = vunpack.c.l.bf16 %v319_v35  ;;  %v323_v53 = vpack.c.bf16 %v311_v21, %v311_v21  ;;  %20 = vst.msk [vmem:[#allocation2] sm:$0x1] %vm19_vm3, %v631_v33 }
 0x199   :  { %v295_v49 = vsel %vm292_vm2, %v294_v44, %v290_v43  ;;  %v338_v52 = vsub.f32 %v310_v18, %v330_v46  ;;  %v320_v55 = vpack.c.bf16 %v308_v47, %v308_v47 }
 0x19a   :  { %v335_v50 = vsub.f32 %v307_v30, %v327_v45  ;;  %v304_v54 = vmul.f32 %v713_v26, %v295_v49  ;;  %v331_v58 = vunpack.c.l.bf16 %v323_v53 }
 0x19b   :  { %555 = vmatmul.msk.f32.gmra.mxu3 %vm104_vm0, %v330_v46  ;;  %v328_v59 = vunpack.c.l.bf16 %v320_v55 }
 0x19c   :  { %v312_v38 = vsub.f32 %v28_v57, %v304_v54  ;;  %v339_v60 = vsub.f32 %v311_v21, %v331_v58 }
 0x19d   :  { %552 = vmatmul.msk.f32.gmra.mxu1 %vm104_vm0, %v327_v45  ;;  %547 = vmatmul.msk.f32.gmra.mxu2 %vm104_vm0, %v338_v52  ;;  %v336_v26 = vsub.f32 %v308_v47, %v328_v59 }
 0x19e   :  { %v324_v0 = vpack.c.bf16 %v312_v38, %v312_v38 }
 0x19f   :  { %544 = vmatmul.msk.f32.gmra.mxu0 %vm104_vm0, %v335_v50 }
 0x1a0   :  { %v332_v2 = vunpack.c.l.bf16 %v324_v0 }
 0x1a2   :  { %v340_v48 = vsub.f32 %v312_v38, %v332_v2 }
 0x1a3   :  { %556 = vmatmul.msk.f32.gmra.mxu3 %vm104_vm0, %v331_v58 }
 0x1a5   :  { %553 = vmatmul.msk.f32.gmra.mxu1 %vm104_vm0, %v328_v59  ;;  %548 = vmatmul.msk.f32.gmra.mxu2 %vm104_vm0, %v339_v60 }
 0x1a7   :  { %545 = vmatmul.msk.f32.gmra.mxu0 %vm104_vm0, %v336_v26  ;;  %v503_v26 = vld [vmem:[#allocation2] sm:$0x1] }
 0x1ab   :  { %557 = vmatmul.msk.f32.gmra.mxu3 %vm104_vm0, %v332_v2 }
 0x1ad   :  { %549 = vmatmul.msk.f32.gmra.mxu2 %vm104_vm0, %v340_v48 }
 0x20a   :  { %v447_v39 = vpop.f32.mrf.mxu1 }
 0x20c   :  { %v382_v3 = vpop.f32.mrf.mxu0 }
 0x20d   :  { %v448_v4 = vadd.f32 %v447_v39, %v382_v3 }
 0x20f   :  { %v471_v5 = vand.u32 2147483647, %v448_v4 }
 0x211   :  { %v479_v6 = vsel %vm104_vm0, %v471_v5, 0.0 }
 0x212   :  { %v450_v7 = vpop.f32.mrf.mxu1  ;;  %480 = vadd.xlane.f32.xlu2 %v479_v6 }
 0x214   :  { %v385_v56 = vpop.f32.mrf.mxu0 }
 0x215   :  { %v451_v8 = vadd.f32 %v450_v7, %v385_v56 }
 0x216   :  { %v459_v51 = vpop.f32.mrf.mxu3 }
 0x217   :  { %v472_v13 = vand.u32 2147483647, %v451_v8 }
 0x218   :  { %v394_v9 = vpop.f32.mrf.mxu2 }
 0x219   :  { %v482_v11 = vsel %vm104_vm0, %v472_v13, 0.0  ;;  %v460_v12 = vadd.f32 %v459_v51, %v394_v9 }
 0x21a   :  { %v453_v14 = vpop.f32.mrf.mxu1  ;;  %483 = vadd.xlane.f32.xlu0 %v482_v11 }
 0x21b   :  { %v475_v15 = vand.u32 2147483647, %v460_v12 }
 0x21c   :  { %v388_v61 = vpop.f32.mrf.mxu0 }
 0x21d   :  { %v454_v16 = vadd.f32 %v453_v14, %v388_v61  ;;  %v491_v22 = vsel %vm104_vm0, %v475_v15, 0.0 }
 0x21e   :  { %v462_v20 = vpop.f32.mrf.mxu3 }
 0x21f   :  { %v473_v17 = vand.u32 2147483647, %v454_v16 }
 0x220   :  { %v397_v63 = vpop.f32.mrf.mxu2 }
 0x221   :  { %v485_v24 = vsel %vm104_vm0, %v473_v17, 0.0  ;;  %v463_v25 = vadd.f32 %v462_v20, %v397_v63 }
 0x222   :  { %492 = vadd.xlane.f32.xlu0 %v491_v22  ;;  %486 = vadd.xlane.f32.xlu1 %v485_v24  ;;  %v456_v27 = vpop.f32.mrf.mxu1 }
 0x223   :  { %v476_v28 = vand.u32 2147483647, %v463_v25 }
 0x224   :  { %v391_v19 = vpop.f32.mrf.mxu0 }
 0x225   :  { %v457_v30 = vadd.f32 %v456_v27, %v391_v19  ;;  %v494_v34 = vsel %vm104_vm0, %v476_v28, 0.0 }
 0x226   :  { %v465_v32 = vpop.f32.mrf.mxu3 }
 0x227   :  { %v474_v31 = vand.u32 2147483647, %v457_v30 }
 0x228   :  { %v400_v18 = vpop.f32.mrf.mxu2 }
 0x229   :  { %v488_v29 = vsel %vm104_vm0, %v474_v31, 0.0  ;;  %v466_v10 = vadd.f32 %v465_v32, %v400_v18 }
 0x22a   :  { %495 = vadd.xlane.f32.xlu1 %v494_v34  ;;  %489 = vadd.xlane.f32.xlu2 %v488_v29 }
 0x22b   :  { %v477_v35 = vand.u32 2147483647, %v466_v10 }
 0x22d   :  { %v497_v40 = vsel %vm104_vm0, %v477_v35, 0.0 }
 0x22e   :  { %v468_v36 = vpop.f32.mrf.mxu3 }
 0x230   :  { %v403_v1 = vpop.f32.mrf.mxu2 }
 0x231   :  { %v469_v37 = vadd.f32 %v468_v36, %v403_v1 }
 0x232   :  { %498 = vadd.xlane.f32.xlu2 %v497_v40 }
 0x233   :  { %v478_v41 = vand.u32 2147483647, %v469_v37 }
 0x235   :  { %v500_v42 = vsel %vm104_vm0, %v478_v41, 0.0 }
 0x236   :  { %501 = vadd.xlane.f32.xlu0 %v500_v42 }
 0x285   :  { %v481_v62 = vpop.xlane.xlu2 %480 }
 0x28d   :  { %v484_v23 = vpop.xlane.xlu0 %483 }
 0x28e   :  { %v504_v44 = vadd.f32 %v484_v23, %v481_v62 }
 0x295   :  { %v487_v43 = vpop.xlane.xlu1 %486  ;;  %v493_v47 = vpop.xlane.xlu0 %492 }
 0x296   :  { %v505_v45 = vadd.f32 %v504_v44, %v487_v43 }
 0x29d   :  { %v490_v46 = vpop.xlane.xlu2 %489  ;;  %v496_v50 = vpop.xlane.xlu1 %495 }
 0x29e   :  { %v506_v21 = vadd.f32 %v505_v45, %v490_v46 }
 0x2a0   :  { %v507_v49 = vadd.f32 %v506_v21, %v493_v47 }
 0x2a2   :  { %v508_v53 = vadd.f32 %v507_v49, %v496_v50 }
 0x2a5   :  { %v499_v52 = vpop.xlane.xlu2 %498 }
 0x2a6   :  { %v509_v54 = vadd.f32 %v508_v53, %v499_v52 }
 0x2a9   :  { %v502_v55 = vpop.xlane.xlu0 %501 }
 0x2aa   :  { %v510_v57 = vadd.f32 %v509_v54, %v502_v55 }
 0x2ac   :  { %v511_v58 = vrot.slane %v510_v57, 4 }
 0x2ae   :  { %v512_v38 = vadd.f32 %v511_v58, %v510_v57 }
 0x2b0   :  { %v513_v59 = vrot.slane %v512_v38, 2 }
 0x2b2   :  { %v514_v60 = vadd.f32 %v513_v59, %v512_v38 }
 0x2b4   :  { %v515_v0 = vrot.slane %v514_v60, 1 }
 0x2b6   :  { %v516_v2 = vadd.f32 %v515_v0, %v514_v60 }
 0x2b8   :  { %v517_v48 = vadd.f32 %v516_v2, %v503_v26 }
 0x2ba   :  { %519 = vst.msk [vmem:[#allocation2] sm:$0x1] %vm19_vm3, %v517_v48 }
 0x2c1   :  { %v523_v39 = vld [vmem:[#allocation2] sm:$0x1] }
 0x2c2   :  { %v524_v3 = vmul.f32 0.00048828125, %v523_v39 }
 0x2c4   :  { %525 = vst.msk [vmem:[#allocation3] sm:$0x1] %vm19_vm3, %v524_v3 }
 0x2c5   :  { %536 = dma.vmem_to_hbm [thread:$0]  %s532_s23, 16, %s534_s26, [#allocation4]  }
 0x2c6   :  { %628 = dma.done.wait [#allocation4], 16  }
 0x2c7   :  { %629 = vsyncadd [#allocation4], 4294967280 }
 0x2c8   :  { %541 = vsyncpa [#allocation4], 1 }

</bundles_post_ra>
